<compile_context>
chip_gen: v7x
topology: tpu7x:2x2x1
jax: 0.10.0
libtpu: 0.0.40
codegen_flags: <defaults>
</compile_context>

<pallas_src>
import functools

import jax
import jax.numpy as jnp
from jax import lax
from jax.experimental import pallas as pl
from jax.experimental.pallas import tpu as pltpu

# Small, structure-preserving stand-ins for the module's hardcoded sizes
# (original: MAX_LENGTH=128, VOCAB=119547 -> D = 15,302,016; same kernel,
# just a much larger K).  Chosen so D is NOT a multiple of 128 to exercise
# the ragged-tail masking path.
MAX_LENGTH = 8
VOCAB = 300
OUT_FEATURES = 3


# --------------------------------------------------------------------------
# layout helper shared by weight preparation and the forward pass
# --------------------------------------------------------------------------
def _layout(d, tk_rows, num_cores):
    """Returns (r, tk, n_k, r_pad) for feature count d."""
    r = -(-d // 128)                                   # rows of 128 lanes
    rows_per_core = -(-r // num_cores)
    tk = max(8, min(int(tk_rows), -(-rows_per_core // 8) * 8))
    tk = (tk // 8) * 8                                 # multiple of 8 sublanes
    n_k_total = -(-r // tk)
    n_k_total = -(-n_k_total // num_cores) * num_cores # divisible across cores
    n_k = n_k_total // num_cores                       # K steps per core
    r_pad = n_k_total * tk
    return r, tk, n_k, r_pad


def prepare_ffn_weights(w, *, tk_rows=8192, num_cores=1, dtype=None):
    """One-time (init) conversion of the PyTorch-layout (OUT, D) weight into
    the zero-padded, lane-dense (OUT, r_pad, 128) layout the kernel streams.

    Do this once when the module is built, not per forward call.
    Pass dtype=jnp.bfloat16 to halve the streamed weight bytes (accumulation
    stays f32 in-kernel); keep f32 for bit-tight numerics.
    """
    out_features, d = w.shape
    _, _, _, r_pad = _layout(d, tk_rows, num_cores)
    w = jnp.pad(w, ((0, 0), (0, r_pad * 128 - d)))     # zeros -> tail contributes 0
    w = jnp.reshape(w, (out_features, r_pad, 128))
    if dtype is not None:
        w = w.astype(dtype)
    return w


# --------------------------------------------------------------------------
# kernel
# --------------------------------------------------------------------------
def _ffn_kernel(x_ref, w_ref, o_ref, acc_ref, *, valid_rows):
    """One (core, k) grid step of y = flatten(x) @ W^T.

    x_ref  : (TK, 128)        activation K-tile (lane-dense)
    w_ref  : (OUT, TK, 128)   weight K-tile (lane-dense, zero-padded tail)
    o_ref  : (1, OUT, 1)      per-core partial output row
    acc_ref: (OUT, 8, 128) f32 per-lane / per-sublane partial sums
    valid_rows: Python int or None -- true number of 128-lane rows of x; used
                to mask the ragged final K block (no program_id inside pl.when).
    """
    k = pl.program_id(1)
    n_k = pl.num_programs(1)
    tk = x_ref.shape[0]
    n_out = w_ref.shape[0]

    @pl.when(k == 0)
    def _init():
        acc_ref[...] = jnp.zeros_like(acc_ref)

    x = x_ref[...].astype(jnp.float32)                         # (TK, 128)
    if valid_rows is not None:
        # Ragged tail: zero rows beyond the true feature count.  The window
        # beyond the array edge holds undefined data, so mask it explicitly
        # (select, not multiply, so NaN garbage cannot propagate).
        c = pl.program_id(0)
        start = (c * n_k + k) * tk
        row_ids = lax.broadcasted_iota(jnp.int32, (tk, 128), 0) + start
        x = jnp.where(row_ids < valid_rows, x, 0.0)

    x3 = x.reshape(tk // 8, 8, 128)                            # keeps (8,128) tiles
    for o in range(n_out):                                     # OUT == 3, unrolled
        w3 = w_ref[o].reshape(tk // 8, 8, 128).astype(jnp.float32)
        # Fused multiply + fold to (8,128): pure VPU vreg adds, no large temp,
        # no XLU work in the hot loop.
        acc_ref[o] += (x3 * w3).sum(axis=0)

    @pl.when(k == n_k - 1)
    def _finalize():
        acc = acc_ref[...]                                     # (OUT, 8, 128)
        totals = acc.sum(axis=1).sum(axis=1)                   # (OUT,) one-time reduce
        o_ref[...] = totals.astype(o_ref.dtype).reshape(o_ref.shape)


# --------------------------------------------------------------------------
# wrapper
# --------------------------------------------------------------------------
@functools.partial(jax.jit, static_argnames=("tk_rows", "num_cores"))
def ffn_forward(x, w3, b, *, tk_rows=8192, num_cores=1):
    """y = reshape(x, (1, K)) @ W^T + b  (PyTorch nn.Linear semantics).

    x  : any shape whose prod() == K
    w3 : (OUT, r_pad, 128) prepared weight from prepare_ffn_weights()
    b  : (OUT,)
    """
    out_features, r_pad_w, _ = w3.shape
    d = x.size
    r, tk, n_k, r_pad = _layout(d, tk_rows, num_cores)
    assert r_pad == r_pad_w, "weights were prepared with different tk_rows/num_cores"

    x_flat = jnp.reshape(x, (-1,))
    if d != r * 128:
        # Lane-tail pad only (< 128 elements).  At the real D = 128*119547 this
        # branch is never taken (D % 128 == 0), so x is never copied per call.
        x_flat = jnp.pad(x_flat, (0, r * 128 - d))
    x2 = jnp.reshape(x_flat, (r, 128))                         # (K/128, 128) lane-dense

    valid_rows = None
    if r < r_pad:
        if num_cores == 1:
            valid_rows = r        # ragged final K block handled in-kernel
        else:
            # TODO(synk): avoid this copy on multi-core chips by masking fully
            # out-of-bounds blocks in-kernel (or pre-padding activations).
            x2 = jnp.pad(x2, ((0, r_pad - r), (0, 0)))

    kernel = functools.partial(_ffn_kernel, valid_rows=valid_rows)

    # VMEM budget: double-buffered x + W tiles plus headroom, clamped.
    tile_bytes = tk * 128 * x2.dtype.itemsize + out_features * tk * 128 * w3.dtype.itemsize
    vmem_limit = max(min(int(2 * tile_bytes + (8 << 20)), 100 << 20), 16 << 20)

    cost = pl.CostEstimate(
        flops=2 * d * out_features,
        transcendentals=0,
        bytes_accessed=int(x2.size * x2.dtype.itemsize
                           + w3.size * w3.dtype.itemsize
                           + num_cores * out_features * 4),
    )

    partials = pl.pallas_call(
        kernel,
        out_shape=jax.ShapeDtypeStruct((num_cores, out_features, 1), jnp.float32),
        grid_spec=pltpu.PrefetchScalarGridSpec(
            num_scalar_prefetch=0,
            grid=(num_cores, n_k),
            in_specs=[
                # activation K-tile, lane-dense
                pl.BlockSpec((tk, 128), lambda c, k: (c * n_k + k, 0)),
                # weight K-tile, lane-dense (all OUT rows resident in the block)
                pl.BlockSpec((out_features, tk, 128),
                             lambda c, k: (0, c * n_k + k, 0)),
            ],
            out_specs=pl.BlockSpec((1, out_features, 1), lambda c, k: (c, 0, 0)),
            scratch_shapes=[pltpu.VMEM((out_features, 8, 128), jnp.float32)],
        ),
        compiler_params=pltpu.CompilerParams(
            # TODO(synk): on v7x, verify this leading axis actually shards the
            # two TensorCores; if not, switch to pltpu.CORE_PARALLEL / core_map.
            dimension_semantics=("parallel", "arbitrary"),
            vmem_limit_bytes=int(vmem_limit),
        ),
        cost_estimate=cost,
    )(x2, w3)

    # Sum per-core partial rows and add the bias once, in the wrapper.
    y = jnp.sum(partials[:, :, 0], axis=0) + b
    return y.reshape(1, out_features).astype(x.dtype)


if __name__ == "__main__":
    key = jax.random.PRNGKey(0)
    kx, kw, kb = jax.random.split(key, 3)

    d = MAX_LENGTH * VOCAB  # small stand-in for 128 * 119547

    # Input shaped like a (seq, vocab) tensor that flattens to (1, d).
    x = jax.random.normal(kx, (MAX_LENGTH, VOCAB), dtype=jnp.float32)

    # Deterministic nn.Linear-style init, weight in PyTorch (OUT, K) layout.
    bound = 1.0 / (d ** 0.5)
    w = jax.random.uniform(kw, (OUT_FEATURES, d), minval=-bound, maxval=bound,
                           dtype=jnp.float32)
    b = jax.random.uniform(kb, (OUT_FEATURES,), minval=-bound, maxval=bound,
                           dtype=jnp.float32)

    # Small tk_rows here so the demo exercises multi-step K accumulation and
    # the ragged final block; the full-size model uses the 8192-row default.
    TK_ROWS = 8
    NUM_CORES = 1

    # One-time weight layout preparation (done at module init, not per call).
    w3 = prepare_ffn_weights(w, tk_rows=TK_ROWS, num_cores=NUM_CORES)

    y = ffn_forward(x, w3, b, tk_rows=TK_ROWS, num_cores=NUM_CORES)
    y = jax.block_until_ready(y)

    # Reference check in plain JAX (same math as torch.nn.Linear).
    y_ref = jnp.reshape(x, (1, d)) @ w.T + b[None, :]
    assert y.shape == (1, OUT_FEATURES)
    assert jnp.allclose(y, y_ref, atol=1e-4, rtol=1e-4), (y, y_ref)

    print("KERNEL_OK")
</pallas_src>

<mosaic_0001>
module attributes {stable_mosaic.version = 11 : i64} {
  func.func @_ffn_kernel(%arg0: i32, %arg1: i32, %arg2: memref<8x128xf32, #tpu.memory_space<vmem>>, %arg3: memref<3x8x128xf32, #tpu.memory_space<vmem>>, %arg4: memref<1x3x1xf32, #tpu.memory_space<vmem>>, %arg5: memref<3x8x128xf32, #tpu.memory_space<vmem>>) attributes {dimension_semantics = [#tpu.dimension_semantics<parallel>, #tpu.dimension_semantics<arbitrary>], iteration_bounds = array<i64: 1, 3>, scalar_prefetch = 0 : i64, scratch_operands = 1 : i64, tpu.core_type = #tpu.core_type<tc>, window_params = [{transform_indices = @transform_0, window_bounds = array<i64: 8, 128>}, {transform_indices = @transform_1, window_bounds = array<i64: 3, 8, 128>}, {transform_indices = @transform_2, window_bounds = array<i64: 1, 3, 1>}]} {
    %c0_i32 = arith.constant 0 : i32
    %0 = arith.cmpi eq, %arg1, %c0_i32 : i32
    %1 = arith.extui %0 : i1 to i32
    %c0_i32_0 = arith.constant 0 : i32
    %2 = arith.cmpi ne, %1, %c0_i32_0 : i32
    scf.if %2 {
      %cst_31 = arith.constant 0.000000e+00 : f32
      %51 = vector.broadcast %cst_31 : f32 to vector<3x8x128xf32>
      %c0_32 = arith.constant 0 : index
      %c0_33 = arith.constant 0 : index
      %c0_34 = arith.constant 0 : index
      %52 = vector.load %arg5[%c0_32, %c0_33, %c0_34] : memref<3x8x128xf32, #tpu.memory_space<vmem>>, vector<3x8x128xf32>
      tpu.vector_store %arg5[%c0_32, %c0_33, %c0_34], %51 {strides = array<i32>} : memref<3x8x128xf32, #tpu.memory_space<vmem>>, vector<3x8x128xf32>,
    } else {
    }
    %c0 = arith.constant 0 : index
    %c0_1 = arith.constant 0 : index
    %3 = vector.load %arg2[%c0, %c0_1] : memref<8x128xf32, #tpu.memory_space<vmem>>, vector<8x128xf32>
    %c3_i32 = arith.constant 3 : i32
    %4 = arith.muli %arg0, %c3_i32 : i32
    %5 = arith.addi %4, %arg1 : i32
    %c8_i32 = arith.constant 8 : i32
    %6 = arith.muli %5, %c8_i32 : i32
    %7 = tpu.iota {dimensions = array<i32: 0>} : vector<8x128xi32>
    %8 = vector.broadcast %6 : i32 to vector<8x128xi32>
    %9 = arith.addi %7, %8 : vector<8x128xi32>
    %c19_i32 = arith.constant 19 : i32
    %10 = vector.broadcast %c19_i32 : i32 to vector<8x128xi32>
    %11 = arith.cmpi slt, %9, %10 : vector<8x128xi32>
    %cst = arith.constant 0.000000e+00 : f32
    %12 = vector.broadcast %cst : f32 to vector<8x128xf32>
    %13 = arith.select %11, %3, %12 : vector<8x128xi1>, vector<8x128xf32>
    %14 = vector.shape_cast %13 : vector<8x128xf32> to vector<1x8x128xf32>
    %c0_2 = arith.constant 0 : index
    %c0_3 = arith.constant 0 : index
    %c0_4 = arith.constant 0 : index
    %15 = vector.load %arg3[%c0_2, %c0_3, %c0_4] : memref<3x8x128xf32, #tpu.memory_space<vmem>>, vector<1x8x128xf32>
    %16 = vector.shape_cast %15 : vector<1x8x128xf32> to vector<8x128xf32>
    %17 = vector.shape_cast %16 : vector<8x128xf32> to vector<1x8x128xf32>
    %c0_5 = arith.constant 0 : index
    %c0_6 = arith.constant 0 : index
    %c0_7 = arith.constant 0 : index
    %18 = vector.load %arg5[%c0_5, %c0_6, %c0_7] : memref<3x8x128xf32, #tpu.memory_space<vmem>>, vector<1x8x128xf32>
    %19 = vector.shape_cast %18 : vector<1x8x128xf32> to vector<8x128xf32>
    %20 = arith.mulf %14, %17 : vector<1x8x128xf32>
    %cst_8 = arith.constant dense<0.000000e+00> : vector<8x128xf32>
    %21 = vector.multi_reduction <add>, %20, %cst_8 [0] : vector<1x8x128xf32> to vector<8x128xf32>
    %22 = arith.addf %19, %21 : vector<8x128xf32>
    %c0_9 = arith.constant 0 : index
    %c0_10 = arith.constant 0 : index
    %c0_11 = arith.constant 0 : index
    %23 = vector.load %arg5[%c0_9, %c0_10, %c0_11] : memref<3x8x128xf32, #tpu.memory_space<vmem>>, vector<1x8x128xf32>
    %24 = vector.shape_cast %23 : vector<1x8x128xf32> to vector<8x128xf32>
    %25 = vector.shape_cast %22 : vector<8x128xf32> to vector<1x8x128xf32>
    tpu.vector_store %arg5[%c0_9, %c0_10, %c0_11], %25 {strides = array<i32>} : memref<3x8x128xf32, #tpu.memory_space<vmem>>, vector<1x8x128xf32>,
    %c1 = arith.constant 1 : index
    %c0_12 = arith.constant 0 : index
    %c0_13 = arith.constant 0 : index
    %26 = vector.load %arg3[%c1, %c0_12, %c0_13] : memref<3x8x128xf32, #tpu.memory_space<vmem>>, vector<1x8x128xf32>
    %27 = vector.shape_cast %26 : vector<1x8x128xf32> to vector<8x128xf32>
    %28 = vector.shape_cast %27 : vector<8x128xf32> to vector<1x8x128xf32>
    %c1_14 = arith.constant 1 : index
    %c0_15 = arith.constant 0 : index
    %c0_16 = arith.constant 0 : index
    %29 = vector.load %arg5[%c1_14, %c0_15, %c0_16] : memref<3x8x128xf32, #tpu.memory_space<vmem>>, vector<1x8x128xf32>
    %30 = vector.shape_cast %29 : vector<1x8x128xf32> to vector<8x128xf32>
    %31 = arith.mulf %14, %28 : vector<1x8x128xf32>
    %cst_17 = arith.constant dense<0.000000e+00> : vector<8x128xf32>
    %32 = vector.multi_reduction <add>, %31, %cst_17 [0] : vector<1x8x128xf32> to vector<8x128xf32>
    %33 = arith.addf %30, %32 : vector<8x128xf32>
    %c1_18 = arith.constant 1 : index
    %c0_19 = arith.constant 0 : index
    %c0_20 = arith.constant 0 : index
    %34 = vector.load %arg5[%c1_18, %c0_19, %c0_20] : memref<3x8x128xf32, #tpu.memory_space<vmem>>, vector<1x8x128xf32>
    %35 = vector.shape_cast %34 : vector<1x8x128xf32> to vector<8x128xf32>
    %36 = vector.shape_cast %33 : vector<8x128xf32> to vector<1x8x128xf32>
    tpu.vector_store %arg5[%c1_18, %c0_19, %c0_20], %36 {strides = array<i32>} : memref<3x8x128xf32, #tpu.memory_space<vmem>>, vector<1x8x128xf32>,
    %c2 = arith.constant 2 : index
    %c0_21 = arith.constant 0 : index
    %c0_22 = arith.constant 0 : index
    %37 = vector.load %arg3[%c2, %c0_21, %c0_22] : memref<3x8x128xf32, #tpu.memory_space<vmem>>, vector<1x8x128xf32>
    %38 = vector.shape_cast %37 : vector<1x8x128xf32> to vector<8x128xf32>
    %39 = vector.shape_cast %38 : vector<8x128xf32> to vector<1x8x128xf32>
    %c2_23 = arith.constant 2 : index
    %c0_24 = arith.constant 0 : index
    %c0_25 = arith.constant 0 : index
    %40 = vector.load %arg5[%c2_23, %c0_24, %c0_25] : memref<3x8x128xf32, #tpu.memory_space<vmem>>, vector<1x8x128xf32>
    %41 = vector.shape_cast %40 : vector<1x8x128xf32> to vector<8x128xf32>
    %42 = arith.mulf %14, %39 : vector<1x8x128xf32>
    %cst_26 = arith.constant dense<0.000000e+00> : vector<8x128xf32>
    %43 = vector.multi_reduction <add>, %42, %cst_26 [0] : vector<1x8x128xf32> to vector<8x128xf32>
    %44 = arith.addf %41, %43 : vector<8x128xf32>
    %c2_27 = arith.constant 2 : index
    %c0_28 = arith.constant 0 : index
    %c0_29 = arith.constant 0 : index
    %45 = vector.load %arg5[%c2_27, %c0_28, %c0_29] : memref<3x8x128xf32, #tpu.memory_space<vmem>>, vector<1x8x128xf32>
    %46 = vector.shape_cast %45 : vector<1x8x128xf32> to vector<8x128xf32>
    %47 = vector.shape_cast %44 : vector<8x128xf32> to vector<1x8x128xf32>
    tpu.vector_store %arg5[%c2_27, %c0_28, %c0_29], %47 {strides = array<i32>} : memref<3x8x128xf32, #tpu.memory_space<vmem>>, vector<1x8x128xf32>,
    %c2_i32 = arith.constant 2 : i32
    %48 = arith.cmpi eq, %arg1, %c2_i32 : i32
    %49 = arith.extui %48 : i1 to i32
    %c0_i32_30 = arith.constant 0 : i32
    %50 = arith.cmpi ne, %49, %c0_i32_30 : i32
    scf.if %50 {
      %c0_31 = arith.constant 0 : index
      %c0_32 = arith.constant 0 : index
      %c0_33 = arith.constant 0 : index
      %51 = vector.load %arg5[%c0_31, %c0_32, %c0_33] : memref<3x8x128xf32, #tpu.memory_space<vmem>>, vector<3x8x128xf32>
      %cst_34 = arith.constant dense<0.000000e+00> : vector<3x128xf32>
      %52 = vector.multi_reduction <add>, %51, %cst_34 [1] : vector<3x8x128xf32> to vector<3x128xf32>
      %cst_35 = arith.constant dense<0.000000e+00> : vector<3xf32>
      %53 = vector.multi_reduction <add>, %52, %cst_35 [1] : vector<3x128xf32> to vector<3xf32>
      %54 = vector.shape_cast %53 : vector<3xf32> to vector<1x3x1xf32>
      %c0_36 = arith.constant 0 : index
      %c0_37 = arith.constant 0 : index
      %c0_38 = arith.constant 0 : index
      %55 = vector.load %arg4[%c0_36, %c0_37, %c0_38] : memref<1x3x1xf32, #tpu.memory_space<vmem>>, vector<1x3x1xf32>
      tpu.vector_store %arg4[%c0_36, %c0_37, %c0_38], %54 {strides = array<i32>} : memref<1x3x1xf32, #tpu.memory_space<vmem>>, vector<1x3x1xf32>,
    } else {
    }
    return
  }
  func.func @transform_0(%arg0: i32, %arg1: i32) -> (i32, i32) {
    %c3_i32 = arith.constant 3 : i32
    %0 = arith.muli %arg0, %c3_i32 : i32
    %1 = arith.addi %0, %arg1 : i32
    %c0_i32 = arith.constant 0 : i32
    %c0_i32_0 = arith.constant 0 : i32
    return %1, %c0_i32 : i32, i32
  }
  func.func @transform_1(%arg0: i32, %arg1: i32) -> (i32, i32, i32) {
    %c3_i32 = arith.constant 3 : i32
    %0 = arith.muli %arg0, %c3_i32 : i32
    %1 = arith.addi %0, %arg1 : i32
    %c0_i32 = arith.constant 0 : i32
    %c0_i32_0 = arith.constant 0 : i32
    %c0_i32_1 = arith.constant 0 : i32
    return %c0_i32, %1, %c0_i32_0 : i32, i32, i32
  }
  func.func @transform_2(%arg0: i32, %arg1: i32) -> (i32, i32, i32) {
    %c0_i32 = arith.constant 0 : i32
    %c0_i32_0 = arith.constant 0 : i32
    %c0_i32_1 = arith.constant 0 : i32
    return %arg0, %c0_i32, %c0_i32_0 : i32, i32, i32
  }
}

</mosaic_0001>

<bundles_post_ra>
// kernel: ffn_forward.1
= control target key start
LH: loop header
LB: loop body
LE: loop exit
PB: predicated region body
PF: predicated region fallthrough
CT: control target
= control target key end

     0   :  { %s505_s9 = smov 0   ;;  %s507_s10 = smov 0   ;;  %s577_s0 = inlined_call_operand.vmem [shape: f32[19,128], index: 0, kind: input, shape index: {}]   ;;  %s578_s1 = inlined_call_operand.vmem [shape: f32[3,24,128], index: 1, kind: input, shape index: {}]   ;;  %s579_s2 = inlined_call_operand.vmem [shape: f32[1,3,1], index: 2, kind: output, shape index: {}]  }
   0x1   :  { %s509_s11 = smov 0   ;;  %s511_s12 = smov 0  }
   0x2   :  { %s513_s13 = smov 0  }
   0x3 LB: > { %s21_s14 = sadd.s32 1, %s483_s12  ;;  %p72_p1 = scmp.ne.s32.totalorder %s475_s10, %s471_s9  ;;  %s487_s13 = sphi %s513_s13, %s12_s13   ;;  %s483_s12 = sphi %s511_s12, %s583_s12   ;;  %s479_s11 = sphi %s509_s11, %s582_s11   ;;  %s475_s10 = sphi %s507_s10, %s581_s10   ;;  %s471_s9 = sphi %s505_s9, %s580_s9  }
   0x4   : > { %p22_p0 = scmp.ge.s32.totalorder %s21_s14, 3  ;;  %p73_p2 = scmp.eq.s32.totalorder %s487_s13, 0 }
   0x5   : > { %s65_s16 = sadd.s32 1, %s475_s10  ;;  %p394_p5 = scmp.ge.s32.totalorder %s487_s13, 3 }
   0x6   : > { %s585_s14 = smov (%p22_p0, %s21_s14), 0  ;;  %p74_p3 = por %p73_p2, %p72_p1 }
   0x7   : > { %s62_s15 = ssub.s32 %s483_s12, %s585_s14  ;;  %124 = sbr.rel (%p394_p5) target bundleno = 21 (0x15), region = 16 }
   0x8   : > { %p63_p4 = scmp.eq.s32.totalorder %s62_s15, 0 }
   0xa   : > { %s540_s17 = scalar_select %p63_p4, %s475_s10, %s65_s16  }
   0xe   : > { %138 = sbr.rel (!%p74_p3) target bundleno = 21 (0x15), region = 24  ;;  %s140_s18 = sand.u32 (%p74_p3), 1, %s475_s10  }
   0xf   : > { %s395_s19 = sshll.u32 (%p74_p3), %s483_s12, 3  ;;  %s406_s20 = smul.u32 (%p74_p3), 24, %s140_s18 }
  0x10   : > { %s146_s23 = scalar_lea.vmem (%p74_p3), %s578_s1, %s395_s19 }
  0x11   : > { %v178_v0 = vld [vmem:[%s146_s23] sm:$0xff] (%p74_p3)  ;;  %v180_v1 = vld [vmem:[%s146_s23 + $0x18] sm:$0xff] (%p74_p3)  ;;  %v182_v2 = vld [vmem:[%s146_s23 + $0x30] sm:$0xff] (%p74_p3)  ;;  %s142_s24 = scalar_lea.vmem (%p74_p3), [#allocation3], %s406_s20 }
  0x12   : > { %179 = vst [vmem:[%s142_s24] sm:$0xff] (%p74_p3), %v178_v0  ;;  %181 = vst [vmem:[%s142_s24 + $0x8] sm:$0xff] (%p74_p3), %v180_v1 }
  0x13   : > { %183 = vst [vmem:[%s142_s24 + $0x10] sm:$0xff] (%p74_p3), %v182_v2 }
  0x15 PF: > { %p396_p6 = scmp.ge.s32.totalorder %s487_s13, 1  ;;  %p188_p7 = scmp.lt.s32.totalorder %s487_s13, 4 }
  0x17   : > { %p189_p8 = pnand %p396_p6, %p188_p7 }
  0x18   : > { %s195_s25 = sand.u32 (!%p189_p8), 1, %s471_s9   ;;  %p223_p9 = scmp.lt.s32.totalorder (!%p189_p8), %s479_s11, 2 }
  0x19   : > { %192 = sbr.rel (%p189_p8) target bundleno = 218 (0xda), region = 62  ;;  %p398_p10 = scmp.ne.s32.totalorder (!%p189_p8), %s479_s11, 0 }
  0x1a   : > { %s407_s26 = smul.u32 (!%p189_p8), 24, %s195_s25 }
  0x1c   : > { %s197_s4 = scalar_lea.vmem (!%p189_p8), [#allocation3], %s407_s26 }
  0x20   : > { %s224_s27 = scalar_select %p223_p9, %s479_s11, 2 }
  0x21   : > { %238 = sbr.rel (%p398_p10) target bundleno = 40 (0x28), region = 70  ;;  %v489_v3 = vmov (!%p398_p10), 0.0  }
  0x22   : > { %s397_s28 = sshll.u32 %s224_s27, 3  ;;  %239 = vst [vmem:[#allocation2] sm:$0xff] (!%p398_p10), %v489_v3  ;;  %240 = vst [vmem:[#allocation2 + $0x8] sm:$0xff] (!%p398_p10), %v489_v3 }
  0x23   : > { %s226_s3 = scalar_lea.vmem %s577_s0, %s397_s28  ;;  %241 = vst [vmem:[#allocation2 + $0x10] sm:$0xff] (!%p398_p10), %v489_v3 }
  0x28 PF: > { %s399_s5 = sshll.u32 %s479_s11, 3  ;;  %v246_v4 = vlaneseq  ;;  %v242_v7 = vld [vmem:[%s226_s3] sm:$0xff]  ;;  %v252_v9 = vld [vmem:[%s197_s4] sm:$0xff]  ;;  %p402_p11 = scmp.ne.s32.totalorder %s479_s11, 2 }
  0x29   : > { %v248_v5 = vstv %s399_s5  ;;  %v400_v10 = vld [vmem:[%s197_s4 + $0x8] sm:$0xff]  ;;  %v401_v11 = vld [vmem:[%s197_s4 + $0x10] sm:$0xff]  ;;  %vm302_vm1 = vcmask (!%p402_p11), 1041409   ;;  %vm304_vm2 = vcmask (!%p402_p11), 1042434   ;;  %vm307_vm3 = vcmask (!%p402_p11), 1042432  }
  0x2a   : > { %v247_v6 = vshrl.u32 %v246_v4, 7  ;;  %v253_v13 = vld [vmem:[#allocation2] sm:$0xff]  ;;  %v261_v14 = vld [vmem:[#allocation2 + $0x8] sm:$0xff]  ;;  %v269_v15 = vld [vmem:[#allocation2 + $0x10] sm:$0xff]  ;;  %vm311_vm4 = vcmask (!%p402_p11), 2048  }
  0x2c   : > { %v249_v8 = vadd.s32 %v248_v5, %v247_v6 }
  0x2e   : > { %vm250_vm0 = vcmp.lt.s32.totalorder %v249_v8, 19 }
  0x2f   : > { %v251_v12 = vsel %vm250_vm0, %v242_v7, 0.0  ;;  %277 = sbr.rel (%p402_p11) target bundleno = 218 (0xda), region = 74 }
  0x30   : > { %v254_v16 = vmul.f32 %v252_v9, %v251_v12  ;;  %v262_v17 = vmul.f32 %v400_v10, %v251_v12  ;;  %v270_v18 = vmul.f32 %v401_v11, %v251_v12 }
  0x32   : > { %v256_v19 = vadd.f32 %v254_v16, %v253_v13  ;;  %v264_v20 = vadd.f32 %v262_v17, %v261_v14  ;;  %v272_v21 = vadd.f32 %v270_v18, %v269_v15 }
  0x34   : > { %257 = vst [vmem:[#allocation2] sm:$0xff] %v256_v19  ;;  %265 = vst [vmem:[#allocation2 + $0x8] sm:$0xff] %v264_v20 }
  0x35   : > { %273 = vst [vmem:[#allocation2 + $0x10] sm:$0xff] %v272_v21 }
  0x3b   : > { %v278_v22 = vld [vmem:[#allocation2] sm:$0xff]  ;;  %v279_v23 = vld [vmem:[#allocation2 + $0x8] sm:$0xff] }
  0x3c   : > { %v280_v24 = vld [vmem:[#allocation2 + $0x10] sm:$0xff]  ;;  %v281_v25 = vrot.slane %v278_v22, 4  ;;  %v287_v26 = vrot.slane %v279_v23, 4 }
  0x3d   : > { %v293_v27 = vrot.slane %v280_v24, 4 }
  0x3e   : > { %v282_v28 = vadd.f32 %v281_v25, %v278_v22  ;;  %v288_v29 = vadd.f32 %v287_v26, %v279_v23 }
  0x3f   : > { %v294_v30 = vadd.f32 %v293_v27, %v280_v24 }
  0x40   : > { %v283_v31 = vrot.slane %v282_v28, 2  ;;  %v289_v32 = vrot.slane %v288_v29, 2 }
  0x41   : > { %v295_v33 = vrot.slane %v294_v30, 2 }
  0x42   : > { %v284_v34 = vadd.f32 %v283_v31, %v282_v28  ;;  %v290_v35 = vadd.f32 %v289_v32, %v288_v29 }
  0x43   : > { %v296_v36 = vadd.f32 %v295_v33, %v294_v30 }
  0x44   : > { %v285_v37 = vrot.slane %v284_v34, 1  ;;  %v291_v38 = vrot.slane %v290_v35, 1 }
  0x45   : > { %v297_v39 = vrot.slane %v296_v36, 1 }
  0x46   : > { %v286_v40 = vadd.f32 %v285_v37, %v284_v34  ;;  %v292_v41 = vadd.f32 %v291_v38, %v290_v35 }
  0x47   : > { %v298_v42 = vadd.f32 %v297_v39, %v296_v36 }
  0x48   : > { %v303_v43 = vsel %vm302_vm1, %v292_v41, %v286_v40 }
  0x49   : > { %v305_v44 = vsel %vm304_vm2, %v298_v42, %v303_v43 }
  0x4a   : > { %v308_v45 = vsel %vm307_vm3, %v305_v44, 0.0 }
  0x4b   : > { %309 = vadd.xlane.f32.xlu0 %v308_v45 }
  0xd8   : > { %v310_v46 = vpop.xlane.xlu0 %309 }
  0xd9   : > { %312 = vst.msk [vmem:[%s579_s2] sm:$0x7] %vm311_vm4, %v310_v46 }
  0xda PF: > { %s12_s13 = sadd.s32 1, %s487_s13   ;;  %s580_s9 = smov %s475_s10 }
  0xdb   : > { %p9_p12 = scmp.ge.s32.totalorder %s12_s13, 5   ;;  %s581_s10 = smov %s540_s17 }
  0xdc   : > { %s582_s11 = smov %s483_s12  ;;  %s583_s12 = smov %s585_s14 }
  0xdd   :  { %11 = sbr.rel (!%p9_p12) target bundleno = 3 (0x3), region = 116 }

</bundles_post_ra>
